<compile_context>
chip_gen: v5e
topology: v5e:2x2
jax: 0.10.0
libtpu: 0.0.40
codegen_flags: <defaults>
</compile_context>

<pallas_src>
import jax
import jax.numpy as jnp
from jax.experimental import pallas as pl
from jax.experimental.pallas import tpu as pltpu


def _copy_kernel(x_ref, o_ref):
    # Identical 2D lane-dense shapes on both sides: a plain copy. Mosaic emits
    # unmasked full-width vector loads/stores with no relayout work.
    o_ref[...] = x_ref[...]


def _pick_row_tile(n_rows: int, row_bytes: int, target_bytes: int = 2 * 1024 * 1024) -> int:
    """Largest row tile (<= ~target_bytes) that satisfies the (8, 128) rule."""
    tm = max(1, target_bytes // max(row_bytes, 1))
    if tm >= n_rows:
        return n_rows                 # full extent is always a legal block dim
    tm = (tm // 8) * 8                # second-minor dim must be a multiple of 8
    return n_rows if tm < 8 else tm


def unflatten(x: jax.Array, C: int, H: int, W: int) -> jax.Array:
    """Pallas equivalent of torch.Tensor.view(-1, C, H, W)."""
    chw = C * H * W
    total = x.size
    if total % chw != 0:
        raise ValueError(f"cannot view array of size {total} as (-1, {C}, {H}, {W})")
    N = total // chw

    # Present the data as a row-major (N, C*H*W) slab — element order unchanged
    # (same contiguity assumption as torch.view). Lane axis width C*H*W is a
    # multiple of 128 here (1024), giving fully dense vector stores.
    x_flat = x.reshape(N, chw)

    tm = _pick_row_tile(N, chw * x_flat.dtype.itemsize)
    grid = (pl.cdiv(N, tm),)

    out_flat = pl.pallas_call(
        _copy_kernel,
        out_shape=jax.ShapeDtypeStruct((N, chw), x.dtype),
        grid=grid,
        in_specs=[pl.BlockSpec((tm, chw), lambda i: (i, 0))],
        out_specs=pl.BlockSpec((tm, chw), lambda i: (i, 0)),
        compiler_params=pltpu.CompilerParams(
            # Row tiles are independent -> shard the grid across the two
            # TensorCores on v7x (harmless no-op on single-TC v5e/v6e).
            dimension_semantics=("parallel",),
            # Explicit VMEM budget that fits every generation (v5e default
            # scoped limit is 16 MiB; v7x physical VMEM is 64 MiB). Double-
            # buffered ~2 MiB in + out tiles stay far below this.
            vmem_limit_bytes=32 * 1024 * 1024,
        ),
        # Tell XLA this custom call is pure HBM traffic (read + write), 0 flops.
        cost_estimate=pl.CostEstimate(
            flops=0,
            transcendentals=0,
            bytes_accessed=2 * total * x.dtype.itemsize,
        ),
    )(x_flat)

    # Final shape change to NCHW is metadata-only (free) outside the kernel.
    return out_flat.reshape(N, C, H, W)


if __name__ == "__main__":
    # Shapes consistent with the module: N=2, C=4, H=16, W=16.
    C, H, W = 4, 16, 16
    N = 2
    key = jax.random.PRNGKey(0)
    # Typical upstream producer of an Unflatten input: a flattened activation.
    x = jax.random.normal(key, (N, C * H * W), dtype=jnp.float32)

    y = unflatten(x, C, H, W)
    y = jax.block_until_ready(y)

    # Correctness check against plain-JAX reshape (== torch.view semantics).
    ref = x.reshape(-1, C, H, W)
    assert y.shape == (N, C, H, W), y.shape
    assert y.dtype == x.dtype
    assert bool(jnp.array_equal(y, ref))

    print("KERNEL_OK")
</pallas_src>

<mosaic_0001>
module attributes {stable_mosaic.version = 11 : i64} {
  func.func @_copy_kernel(%arg0: i32, %arg1: memref<2x1024xf32, #tpu.memory_space<vmem>>, %arg2: memref<2x1024xf32, #tpu.memory_space<vmem>>) attributes {dimension_semantics = [#tpu.dimension_semantics<parallel>], iteration_bounds = array<i64: 1>, scalar_prefetch = 0 : i64, scratch_operands = 0 : i64, tpu.core_type = #tpu.core_type<tc>, window_params = [{transform_indices = @transform_0, window_bounds = array<i64: 2, 1024>}, {transform_indices = @transform_1, window_bounds = array<i64: 2, 1024>}]} {
    %c0 = arith.constant 0 : index
    %c0_0 = arith.constant 0 : index
    %0 = vector.load %arg1[%c0, %c0_0] : memref<2x1024xf32, #tpu.memory_space<vmem>>, vector<2x1024xf32>
    %c0_1 = arith.constant 0 : index
    %c0_2 = arith.constant 0 : index
    %1 = vector.load %arg2[%c0_1, %c0_2] : memref<2x1024xf32, #tpu.memory_space<vmem>>, vector<2x1024xf32>
    tpu.vector_store %arg2[%c0_1, %c0_2], %0 {strides = array<i32>} : memref<2x1024xf32, #tpu.memory_space<vmem>>, vector<2x1024xf32>,
    return
  }
  func.func @transform_0(%arg0: i32) -> (i32, i32) {
    %c0_i32 = arith.constant 0 : i32
    %c0_i32_0 = arith.constant 0 : i32
    return %arg0, %c0_i32 : i32, i32
  }
  func.func @transform_1(%arg0: i32) -> (i32, i32) {
    %c0_i32 = arith.constant 0 : i32
    %c0_i32_0 = arith.constant 0 : i32
    return %arg0, %c0_i32 : i32, i32
  }
}

</mosaic_0001>

<bundles_post_ra>
// kernel: tpu_custom_call.1
= control target key start
LH: loop header
LB: loop body
LE: loop exit
PB: predicated region body
PF: predicated region fallthrough
CT: control target
= control target key end

     0   :  { %6 = vsyncpa [#allocation3], 0  ;;  %s116_s0 = inlined_call_operand.hbm [shape: f32[2,1024], index: 0, kind: input, shape index: {}]   ;;  %s117_s1 = inlined_call_operand.hbm [shape: f32[2,1024], index: 1, kind: output, shape index: {}]  }
   0x1   :  { %7 = vsyncpa [#allocation4], 0  ;;  %s13_s8 = sshll.u32 %s116_s0, 4  ;;  %s98_s9 = smov [#allocation2]   ;;  %s14_s8 = int_to_ptr.hbm [resolvable:$true] %s13_s8 }
   0x2   :  { %s15_s10 = sshll.u32 %s98_s9, 4  ;;  %s16_s10 = int_to_ptr.vmem [resolvable:$true] %s15_s10 }
   0x3   :  { %18 = dma.hbm_to_vmem [thread:$0]  %s14_s8, 256, %s16_s10, [#allocation3]  }
   0x4   :  { %94 = dma.done.wait [#allocation3], 256  }
   0x5   :  { %95 = vsyncadd [#allocation3], 4294967040  ;;  %s99_s11 = smov [#allocation5]   ;;  %s34_s15 = sshll.u32 %s117_s1, 4  ;;  %v23_v0 = vld [vmem:[#allocation2] sm:$0xff]  ;;  %v24_v1 = vld [vmem:[#allocation2 + $0x8] sm:$0xff]  ;;  %s35_s15 = int_to_ptr.hbm [resolvable:$true] %s34_s15 }
   0x6   :  { %s32_s12 = sshll.u32 %s99_s11, 4  ;;  %25 = vst [vmem:[#allocation5] sm:$0xff] %v23_v0  ;;  %s33_s12 = int_to_ptr.vmem [resolvable:$true] %s32_s12 }
   0x7   :  { %26 = vst [vmem:[#allocation5 + $0x8] sm:$0xff] %v24_v1 }
   0x8   :  { %37 = dma.vmem_to_hbm [thread:$0]  %s33_s12, 256, %s35_s15, [#allocation4]  }
   0x9   :  { %96 = dma.done.wait [#allocation4], 256  }
   0xa   :  { %97 = vsyncadd [#allocation4], 4294967040 }
   0xb   :  { %42 = vsyncpa [#allocation3], 1 }
   0xc   :  { %43 = vsyncpa [#allocation4], 1 }

</bundles_post_ra>
